<compile_context>
chip_gen: v7x
topology: tpu7x:2x2x1
jax: 0.10.0
libtpu: 0.0.40
codegen_flags: <defaults>
</compile_context>

<pallas_src>
import functools
import math

import jax
import jax.numpy as jnp
from jax.experimental import pallas as pl
from jax.experimental.pallas import tpu as pltpu


def _round_up(v, m):
    return ((v + m - 1) // m) * m


# ----------------------------- Pallas kernel ------------------------------ #
def _hyp_exp_kernel(x_ref, num_ref, lognum_ref, s_ref, lmd_ref, coeff_ref,
                    real_ref, imag_ref, *, rho, rho_int, use_int_pow):
    x_aug = x_ref[...]        # (tn, Daug)  lanes = [x, |x|^2, 1, 0...]
    s_aug = s_ref[...]        # (Daug, tm)  rows  = [-2 b ; 1 ; |b|^2 ; 0...]
    num = num_ref[...]        # (tn, 1)     1 - |x|^2
    lognum = lognum_ref[...]  # (tn, 1)     log1p(-|x|^2)
    lmd = lmd_ref[...]        # (1, tm)
    coeff = coeff_ref[...]    # (1, tm)

    # Single MXU matmul emits |x - b|^2 = |x|^2 - 2 x.b + |b|^2 directly.
    dist = jnp.dot(x_aug, s_aug, preferred_element_type=jnp.float32)  # (tn, tm)
    # Expanded form can cancel to <= 0 in f32 near the boundary; clamp.
    dist = jnp.maximum(dist, 1e-30)

    log_xb = lognum - jnp.log(dist)                                   # (tn, tm)
    theta = lmd * log_xb

    if use_int_pow:
        # rho is a small integer (odd manifold.n): replace exp(rho*log_xb) by
        # ((1-|x|^2)/|x-b|^2)^rho, using an approximate reciprocal refined by
        # two Newton steps (VPU has slack; EUP sees only a cheap vrcp).
        if rho_int == 0:
            mag = jnp.broadcast_to(coeff, dist.shape)
        else:
            inv_d = pl.reciprocal(dist, approx=True)
            inv_d = inv_d * (2.0 - dist * inv_d)
            inv_d = inv_d * (2.0 - dist * inv_d)
            ratio = num * inv_d
            acc = ratio
            for _ in range(rho_int - 1):
                acc = acc * ratio
            mag = coeff * acc
    else:
        mag = coeff * jnp.exp(rho * log_xb)

    real_ref[...] = mag * jnp.cos(theta)
    imag_ref[...] = -(mag * jnp.sin(theta))


# ------------------------------- wrapper ---------------------------------- #
def hyp_shifted_normalized_exp(x, shift, lmd, coeff, manifold_n, *,
                               tn=256, tm=1024):
    """x: [N, D], shift: [M, D], lmd/coeff: [M].  Returns complex64 [N, M]."""
    x = jnp.asarray(x, jnp.float32)
    shift = jnp.asarray(shift, jnp.float32)
    lmd = jnp.asarray(lmd, jnp.float32).reshape(-1)
    coeff = jnp.asarray(coeff, jnp.float32).reshape(-1)

    N, D = x.shape
    M = shift.shape[0]
    rho = (manifold_n - 1) / 2.0
    rho_int = int(round(rho))
    use_int_pow = abs(rho - rho_int) < 1e-12   # odd manifold.n

    # --- pad / tile geometry ------------------------------------------------
    Daug = max(8, _round_up(D + 2, 8))          # [x | |x|^2 | 1] + zero fill
    Npad = _round_up(N, 8)
    tn = max(8, _round_up(min(tn, Npad), 8))
    Npad = _round_up(Npad, tn)
    Mpad = _round_up(M, 128)
    tm = max(128, _round_up(min(tm, Mpad), 128))
    Mpad = _round_up(Mpad, tm)

    x_sq = jnp.sum(x * x, axis=1)               # (N,)
    b_sq = jnp.sum(shift * shift, axis=1)       # (M,)

    # Augmented x: [x, |x|^2, 1, 0...] (padded rows: all zeros except the 1).
    x_aug = jnp.zeros((Npad, Daug), jnp.float32)
    x_aug = x_aug.at[:N, :D].set(x)
    x_aug = x_aug.at[:N, D].set(x_sq)
    x_aug = x_aug.at[:, D + 1].set(1.0)

    num = jnp.ones((Npad, 1), jnp.float32).at[:N, 0].set(1.0 - x_sq)
    lognum = jnp.zeros((Npad, 1), jnp.float32).at[:N, 0].set(jnp.log1p(-x_sq))

    # Augmented shift^T: rows [-2 b ; ones ; |b|^2 ; 0...]. Padded M columns
    # get b=0, |b|^2=1 so dist = |x|^2 + 1 >= 1 (finite, sliced away later).
    s_aug = jnp.zeros((Daug, Mpad), jnp.float32)
    s_aug = s_aug.at[:D, :M].set(-2.0 * shift.T)
    s_aug = s_aug.at[D, :].set(1.0)
    s_aug = s_aug.at[D + 1, :M].set(b_sq)
    s_aug = s_aug.at[D + 1, M:].set(1.0)

    lmd_p = jnp.zeros((1, Mpad), jnp.float32).at[0, :M].set(lmd)
    coeff_p = jnp.zeros((1, Mpad), jnp.float32).at[0, :M].set(coeff)

    grid = (Npad // tn, Mpad // tm)

    # Rough double-buffered VMEM estimate (f32, lanes padded to 128) so large
    # caller-requested tiles can raise the scoped limit; clamped to stay safe
    # on v7x (64 MiB physical).
    est = 8 * (tn * Daug + 2 * tn * 128 + Daug * tm + 2 * 8 * tm + 2 * tn * tm)
    vmem_limit = int(min(48 * 1024 * 1024, max(32 * 1024 * 1024, 2 * est)))

    kernel = functools.partial(_hyp_exp_kernel, rho=rho, rho_int=rho_int,
                               use_int_pow=use_int_pow)
    real, imag = pl.pallas_call(
        kernel,
        out_shape=(jax.ShapeDtypeStruct((Npad, Mpad), jnp.float32),
                   jax.ShapeDtypeStruct((Npad, Mpad), jnp.float32)),
        grid_spec=pltpu.PrefetchScalarGridSpec(
            num_scalar_prefetch=0,
            grid=grid,
            in_specs=[
                pl.BlockSpec((tn, Daug), lambda i, j: (i, 0)),   # augmented x
                pl.BlockSpec((tn, 1), lambda i, j: (i, 0)),      # 1 - |x|^2
                pl.BlockSpec((tn, 1), lambda i, j: (i, 0)),      # log1p(-|x|^2)
                pl.BlockSpec((Daug, tm), lambda i, j: (0, j)),   # augmented b^T
                pl.BlockSpec((1, tm), lambda i, j: (0, j)),      # lmd
                pl.BlockSpec((1, tm), lambda i, j: (0, j)),      # coeff
            ],
            out_specs=[
                pl.BlockSpec((tn, tm), lambda i, j: (i, j)),
                pl.BlockSpec((tn, tm), lambda i, j: (i, j)),
            ],
        ),
        compiler_params=pltpu.CompilerParams(
            dimension_semantics=("parallel", "parallel"),
            vmem_limit_bytes=vmem_limit),
    )(x_aug, num, lognum, s_aug, lmd_p, coeff_p)

    return jax.lax.complex(real[:N, :M], imag[:N, :M])


# ----------------------- parameter setup (plain JAX) ----------------------- #
def c_function(lmd, n):
    """Mirror of HypShiftedNormailizedExp.c_function (normalization coeff)."""
    if n % 2 == 0:
        adds = jnp.asarray([(2 * i + 1) ** 2 / 4 for i in range(n // 2 - 1)],
                           dtype=jnp.float32)
    else:
        adds = jnp.asarray([i ** 2 for i in range(n // 2)], dtype=jnp.float32)
    lmd = lmd.astype(jnp.float32)
    lmd_sq = jnp.square(lmd)
    if adds.size > 0:
        log_c = jnp.sum(jnp.log(lmd_sq[:, None] + adds[None, :]), axis=1)
    else:
        log_c = jnp.zeros_like(lmd)
    if n % 2 == 0:
        log_c = log_c + jnp.log(lmd) + jnp.log(jnp.tanh(math.pi * lmd))
    return jnp.squeeze(jnp.exp(log_c / 2))


# ------------------------------ reference --------------------------------- #
def _reference(x, shift, lmd, coeff, n):
    rho = (n - 1) / 2.0
    diff = x[:, None, :] - shift[None, :, :]
    dist = jnp.sum(diff * diff, axis=-1)                       # (N, M)
    num = jnp.log1p(-jnp.sum(x * x, axis=1))                   # (N,)
    log_xb = num[:, None] - jnp.log(dist)                      # (N, M)
    inner = log_xb.astype(jnp.complex64) * \
        (rho - 1j * lmd.astype(jnp.complex64))[None, :]
    return jnp.exp(inner) * coeff.astype(jnp.complex64)[None, :]


if __name__ == "__main__":
    def run_case(manifold_n, N, M, key):
        D = manifold_n
        kx, kb, kl = jax.random.split(key, 3)
        # Points strictly inside the unit ball (Poincare model), |x| < 0.5.
        x = 0.5 * jax.random.uniform(kx, (N, D), jnp.float32,
                                     minval=-1.0, maxval=1.0) / math.sqrt(D)
        # Boundary points |b| = 1.
        b_raw = jax.random.normal(kb, (M, D), jnp.float32)
        shift = b_raw / jnp.linalg.norm(b_raw, axis=1, keepdims=True)
        # Positive frequencies.
        lmd = jax.random.uniform(kl, (M,), jnp.float32, minval=0.5, maxval=2.0)
        coeff = c_function(lmd, manifold_n)

        out = hyp_shifted_normalized_exp(x, shift, lmd, coeff, manifold_n)
        out = jax.block_until_ready(out)
        ref = _reference(x, shift, lmd, coeff, manifold_n)
        assert out.shape == (N, M) and out.dtype == jnp.complex64
        assert jnp.allclose(out, ref, rtol=2e-4, atol=1e-5), \
            f"mismatch vs reference (manifold_n={manifold_n})"

    key = jax.random.PRNGKey(0)
    k1, k2 = jax.random.split(key)
    run_case(manifold_n=5, N=16, M=8, key=k1)   # odd n  -> integer-rho path
    run_case(manifold_n=4, N=16, M=8, key=k2)   # even n -> exp fallback path
    print("KERNEL_OK")
</pallas_src>

<mosaic_0001>
module attributes {stable_mosaic.version = 11 : i64} {
  func.func @_hyp_exp_kernel(%arg0: i32, %arg1: i32, %arg2: memref<16x8xf32, #tpu.memory_space<vmem>>, %arg3: memref<16x1xf32, #tpu.memory_space<vmem>>, %arg4: memref<16x1xf32, #tpu.memory_space<vmem>>, %arg5: memref<8x128xf32, #tpu.memory_space<vmem>>, %arg6: memref<1x128xf32, #tpu.memory_space<vmem>>, %arg7: memref<1x128xf32, #tpu.memory_space<vmem>>, %arg8: memref<16x128xf32, #tpu.memory_space<vmem>>, %arg9: memref<16x128xf32, #tpu.memory_space<vmem>>) attributes {dimension_semantics = [#tpu.dimension_semantics<parallel>, #tpu.dimension_semantics<parallel>], iteration_bounds = array<i64: 1, 1>, scalar_prefetch = 0 : i64, scratch_operands = 0 : i64, tpu.core_type = #tpu.core_type<tc>, window_params = [{transform_indices = @transform_0, window_bounds = array<i64: 16, 8>}, {transform_indices = @transform_1, window_bounds = array<i64: 16, 1>}, {transform_indices = @transform_2, window_bounds = array<i64: 16, 1>}, {transform_indices = @transform_3, window_bounds = array<i64: 8, 128>}, {transform_indices = @transform_4, window_bounds = array<i64: 1, 128>}, {transform_indices = @transform_5, window_bounds = array<i64: 1, 128>}, {transform_indices = @transform_6, window_bounds = array<i64: 16, 128>}, {transform_indices = @transform_7, window_bounds = array<i64: 16, 128>}]} {
    %c0 = arith.constant 0 : index
    %c0_0 = arith.constant 0 : index
    %0 = vector.load %arg2[%c0, %c0_0] : memref<16x8xf32, #tpu.memory_space<vmem>>, vector<16x8xf32>
    %c0_1 = arith.constant 0 : index
    %c0_2 = arith.constant 0 : index
    %1 = vector.load %arg5[%c0_1, %c0_2] : memref<8x128xf32, #tpu.memory_space<vmem>>, vector<8x128xf32>
    %c0_3 = arith.constant 0 : index
    %c0_4 = arith.constant 0 : index
    %2 = vector.load %arg3[%c0_3, %c0_4] : memref<16x1xf32, #tpu.memory_space<vmem>>, vector<16x1xf32>
    %c0_5 = arith.constant 0 : index
    %c0_6 = arith.constant 0 : index
    %3 = vector.load %arg4[%c0_5, %c0_6] : memref<16x1xf32, #tpu.memory_space<vmem>>, vector<16x1xf32>
    %c0_7 = arith.constant 0 : index
    %c0_8 = arith.constant 0 : index
    %4 = vector.load %arg6[%c0_7, %c0_8] : memref<1x128xf32, #tpu.memory_space<vmem>>, vector<1x128xf32>
    %c0_9 = arith.constant 0 : index
    %c0_10 = arith.constant 0 : index
    %5 = vector.load %arg7[%c0_9, %c0_10] : memref<1x128xf32, #tpu.memory_space<vmem>>, vector<1x128xf32>
    %cst = arith.constant dense<0.000000e+00> : vector<16x128xf32>
    %6 = tpu.matmul %0, %1, %cst {dimension_numbers = #tpu.dot_dimension_numbers<[1], [0], [0], [1], [0, 0, 1, 1], [], []>} : vector<16x8xf32>, vector<8x128xf32>, vector<16x128xf32> -> vector<16x128xf32>
    %cst_11 = arith.constant 1.000000e-30 : f32
    %7 = vector.broadcast %cst_11 : f32 to vector<16x128xf32>
    %8 = arith.maximumf %6, %7 : vector<16x128xf32>
    %9 = math.log %8 : vector<16x128xf32>
    %10 = vector.broadcast %3 : vector<16x1xf32> to vector<16x128xf32>
    %11 = arith.subf %10, %9 : vector<16x128xf32>
    %12 = vector.broadcast %4 : vector<1x128xf32> to vector<16x128xf32>
    %13 = arith.mulf %12, %11 : vector<16x128xf32>
    %14 = tpu.reciprocal %8 {approx = true} : vector<16x128xf32> -> vector<16x128xf32>
    %15 = arith.mulf %8, %14 : vector<16x128xf32>
    %cst_12 = arith.constant 2.000000e+00 : f32
    %16 = vector.broadcast %cst_12 : f32 to vector<16x128xf32>
    %17 = arith.subf %16, %15 : vector<16x128xf32>
    %18 = arith.mulf %14, %17 : vector<16x128xf32>
    %19 = arith.mulf %8, %18 : vector<16x128xf32>
    %cst_13 = arith.constant 2.000000e+00 : f32
    %20 = vector.broadcast %cst_13 : f32 to vector<16x128xf32>
    %21 = arith.subf %20, %19 : vector<16x128xf32>
    %22 = arith.mulf %18, %21 : vector<16x128xf32>
    %23 = vector.broadcast %2 : vector<16x1xf32> to vector<16x128xf32>
    %24 = arith.mulf %23, %22 : vector<16x128xf32>
    %25 = arith.mulf %24, %24 : vector<16x128xf32>
    %26 = vector.broadcast %5 : vector<1x128xf32> to vector<16x128xf32>
    %27 = arith.mulf %26, %25 : vector<16x128xf32>
    %28 = math.cos %13 : vector<16x128xf32>
    %29 = arith.mulf %27, %28 : vector<16x128xf32>
    %c0_14 = arith.constant 0 : index
    %c0_15 = arith.constant 0 : index
    %30 = vector.load %arg8[%c0_14, %c0_15] : memref<16x128xf32, #tpu.memory_space<vmem>>, vector<16x128xf32>
    tpu.vector_store %arg8[%c0_14, %c0_15], %29 {strides = array<i32>} : memref<16x128xf32, #tpu.memory_space<vmem>>, vector<16x128xf32>,
    %31 = math.sin %13 : vector<16x128xf32>
    %32 = arith.mulf %27, %31 : vector<16x128xf32>
    %cst_16 = arith.constant 0.000000e+00 : f32
    %33 = vector.broadcast %cst_16 : f32 to vector<16x128xf32>
    %34 = arith.subf %33, %32 : vector<16x128xf32>
    %c0_17 = arith.constant 0 : index
    %c0_18 = arith.constant 0 : index
    %35 = vector.load %arg9[%c0_17, %c0_18] : memref<16x128xf32, #tpu.memory_space<vmem>>, vector<16x128xf32>
    tpu.vector_store %arg9[%c0_17, %c0_18], %34 {strides = array<i32>} : memref<16x128xf32, #tpu.memory_space<vmem>>, vector<16x128xf32>,
    return
  }
  func.func @transform_0(%arg0: i32, %arg1: i32) -> (i32, i32) {
    %c0_i32 = arith.constant 0 : i32
    %c0_i32_0 = arith.constant 0 : i32
    return %arg0, %c0_i32 : i32, i32
  }
  func.func @transform_1(%arg0: i32, %arg1: i32) -> (i32, i32) {
    %c0_i32 = arith.constant 0 : i32
    %c0_i32_0 = arith.constant 0 : i32
    return %arg0, %c0_i32 : i32, i32
  }
  func.func @transform_2(%arg0: i32, %arg1: i32) -> (i32, i32) {
    %c0_i32 = arith.constant 0 : i32
    %c0_i32_0 = arith.constant 0 : i32
    return %arg0, %c0_i32 : i32, i32
  }
  func.func @transform_3(%arg0: i32, %arg1: i32) -> (i32, i32) {
    %c0_i32 = arith.constant 0 : i32
    %c0_i32_0 = arith.constant 0 : i32
    return %c0_i32, %arg1 : i32, i32
  }
  func.func @transform_4(%arg0: i32, %arg1: i32) -> (i32, i32) {
    %c0_i32 = arith.constant 0 : i32
    %c0_i32_0 = arith.constant 0 : i32
    return %c0_i32, %arg1 : i32, i32
  }
  func.func @transform_5(%arg0: i32, %arg1: i32) -> (i32, i32) {
    %c0_i32 = arith.constant 0 : i32
    %c0_i32_0 = arith.constant 0 : i32
    return %c0_i32, %arg1 : i32, i32
  }
  func.func @transform_6(%arg0: i32, %arg1: i32) -> (i32, i32) {
    %c0_i32 = arith.constant 0 : i32
    return %arg0, %arg1 : i32, i32
  }
  func.func @transform_7(%arg0: i32, %arg1: i32) -> (i32, i32) {
    %c0_i32 = arith.constant 0 : i32
    return %arg0, %arg1 : i32, i32
  }
}

</mosaic_0001>

<bundles_post_ra>
// kernel: tpu_custom_call.1
= control target key start
LH: loop header
LB: loop body
LE: loop exit
PB: predicated region body
PF: predicated region fallthrough
CT: control target
= control target key end

     0   :  { %13 = vsyncpa [#allocation3], 0  ;;  %vm36_vm0 = vcmask 64512   ;;  %v749_v4 = vmov 0   ;;  %s945_s0 = inlined_call_operand.vmem [shape: f32[16,8], index: 0, kind: input, shape index: {}]   ;;  %s946_s1 = inlined_call_operand.vmem [shape: f32[16,1], index: 1, kind: input, shape index: {}]   ;;  %s947_s2 = inlined_call_operand.vmem [shape: f32[16,1], index: 2, kind: input, shape index: {}]   ;;  %s948_s3 = inlined_call_operand.vmem [shape: f32[8,128], index: 3, kind: input, shape index: {}]   ;;  %s949_s4 = inlined_call_operand.vmem [shape: f32[1,128], index: 4, kind: input, shape index: {}]   ;;  %s950_s5 = inlined_call_operand.vmem [shape: f32[1,128], index: 5, kind: input, shape index: {}]   ;;  %s951_s6 = inlined_call_operand.hbm [shape: f32[16,128], index: 6, kind: output, shape index: {0}]   ;;  %s952_s7 = inlined_call_operand.hbm [shape: f32[16,128], index: 7, kind: output, shape index: {1}]  }
   0x1   :  { %v29_v0 = vld [vmem:[%s948_s3] sm:$0xff]  ;;  %v28_v2 = vld [vmem:[%s945_s0 + $0x8] sm:$0xff]  ;;  %683 = vset.pattern.permute.xlu0 %v749_v4 }
   0x2   :  { %v27_v1 = vld [vmem:[%s945_s0] sm:$0xff]  ;;  %659 = vmatprep.subr.mxu0 %v29_v0 }
   0x3   :  { %661 = vmatprep.mubr.msk.f32.mxu0 %vm36_vm0, %v27_v1  ;;  %v32_v3 = vld [vmem:[%s947_s2] sm:$0xff]  ;;  %660 = vmatpush3.msra.mxu0 %v29_v0 }
   0x4   :  { %v30_v5 = vld [vmem:[%s946_s1] sm:$0xff] }
   0x5   :  { %14 = vsyncpa [#allocation5], 0  ;;  %662 = vmatmul.mubr.msk.f32.vlgmr.msra.gmra.mrb[0].mxu0 %vm36_vm0, %v28_v2  ;;  %126 = vperm.xlu0 %683, %v32_v3   ;;  %v33_v6 = vld [vmem:[%s947_s2 + $0x8] sm:$0xff]  ;;  %v638_v16 = vld [vmem:[%s949_s4] ss:$0 sm:$0xff]  ;;  %s757_s15 = smov [#allocation4]  }
   0x6   :  { %684 = vset.pattern.permute.xlu1 %v749_v4  ;;  %v31_v7 = vld [vmem:[%s946_s1 + $0x8] sm:$0xff]  ;;  %v750_v43 = vmov 683565275   ;;  %v751_v47 = vmov 2475754826   ;;  %s621_s16 = sshll.u32 %s757_s15, 4  ;;  %s914_s16 = int_to_ptr.vmem [resolvable:$true] %s621_s16 }
   0x7   :  { %160 = vperm.xlu1 %684, %v30_v5   ;;  %v752_v49 = vmov 2131351028   ;;  %v753_v51 = vmov 2102212464   ;;  %v754_v53 = vmov 920167782  }
   0x8   :  { %v755_v60 = vmov 1326507024  }
   0x9   :  { %131 = vperm.xlu0 %683, %v33_v6  }
   0xb   :  { %165 = vperm.xlu1 %684, %v31_v7  }
  0x84   :  { %v127_v12 = vpop.permute.xlu0 %126 }
  0x88   :  { %v132_v19 = vpop.permute.xlu0 %131 }
  0xd8   :  { %v663_v8 = vpop.f32.mrb[0].mxu0 }
  0xd9   :  { %v109_v9 = vpop.f32.mrb[1].mxu0  ;;  %v821_v10 = vmax.f32 %v663_v8, 1e-30 }
  0xda   :  { %v823_v11 = vmax.f32 %v109_v9, 1e-30 }
  0xdc   :  { %685 = vlog2.f32 %v823_v11 }
  0xdd   :  { %687 = vlog2.f32 %v821_v10 }
  0xde   :  { %689 = vrcp.f32 %v823_v11 }
  0xdf   :  { %691 = vrcp.f32 %v821_v10 }
  0xe6   :  { %v686_v13 = vpop.eup %685 }
  0xe7   :  { %v688_v14 = vpop.eup %687  ;;  %v121_v15 = vmul.f32 0.6931472, %v686_v13 }
  0xe8   :  { %v123_v17 = vmul.f32 0.6931472, %v688_v14 }
  0xe9   :  { %v134_v18 = vsub.f32 %v127_v12, %v121_v15 }
  0xea   :  { %v135_v20 = vsub.f32 %v132_v19, %v123_v17 }
  0xeb   :  { %v830_v21 = vmul.f32 %v638_v16, %v134_v18 }
  0xec   :  { %v832_v22 = vmul.f32 %v638_v16, %v135_v20 }
  0xed   :  { %v180_v23 = vand.u32 2147483647, %v830_v21  ;;  %v183_v24 = vand.u32 2139095040, %v830_v21  ;;  %vm182_vm15 = vcmp.lt.s32.totalorder %v830_v21, 0 }
  0xee   :  { %v286_v25 = vand.u32 2139095040, %v832_v22  ;;  %v283_v28 = vand.u32 2147483647, %v832_v22 }
  0xef   :  { %v184_v26 = vshrl.u32 %v183_v24, 23  ;;  %v187_v27 = vand.u32 8388607, %v180_v23  ;;  %vm181_vm0 = vcmp.le.f32.partialorder %v180_v23, 0.7853982 }
  0xf0   :  { %v287_v29 = vshrl.u32 %v286_v25, 23  ;;  %v842_v34 = vand.u32 8388607, %v283_v28 }
  0xf1   :  { %v640_v30 = vadd.s32 4294967169, %v184_v26  ;;  %v188_v33 = vor.u32 8388608, %v187_v27 }
  0xf2   :  { %v644_v31 = vadd.s32 4294967169, %v287_v29  ;;  %v291_v41 = vor.u32 8388608, %v842_v34 }
  0xf3   :  { %v190_v32 = vadd.s32 1, %v640_v30  ;;  %v844_v40 = vshll.u32 %v188_v33, 8 }
  0xf4   :  { %v293_v35 = vadd.s32 1, %v644_v31 }
  0xf5   :  { %vm191_vm1 = vcmp.gt.s32.totalorder %v190_v32, 0 }
  0xf6   :  { %v192_v36 = vsel %vm191_vm1, %v190_v32, 0  ;;  %vm294_vm2 = vcmp.gt.s32.totalorder %v293_v35, 0  ;;  %vm285_vm1 = vcmp.lt.s32.totalorder %v832_v22, 0 }
  0xf7   :  { %v193_v37 = vshrl.u32 %v192_v36, 5  ;;  %v194_v38 = vand.u32 31, %v192_v36  ;;  %v295_v39 = vsel %vm294_vm2, %v293_v35, 0  ;;  %vm284_vm2 = vcmp.le.f32.partialorder %v283_v28, 0.7853982 }
  0xf8   :  { %v847_v45 = vshrl.u32 %v295_v39, 5  ;;  %v297_v46 = vand.u32 31, %v295_v39  ;;  %v639_v28 = vld [vmem:[%s950_s5] ss:$0 sm:$0xff]  ;;  %s756_s5 = smov [#allocation2]  }
  0xf9   :  { %v195_v42 = vsub.s32 32, %v194_v38  ;;  %v197_v44 = vshll.u32 %v750_v43, %v194_v38  ;;  %v200_v48 = vshll.u32 %v751_v47, %v194_v38  ;;  %v203_v50 = vshll.u32 %v752_v49, %v194_v38  ;;  %s609_s14 = sshll.u32 %s756_s5, 4  ;;  %s610_s14 = int_to_ptr.vmem [resolvable:$true] %s609_s14 }
  0xfa   :  { %v206_v52 = vshll.u32 %v753_v51, %v194_v38  ;;  %v209_v54 = vshll.u32 %v754_v53, %v194_v38  ;;  %vm212_vm3 = vcmp.lt.s32.totalorder %v193_v37, 1  ;;  %vm213_vm4 = vcmp.lt.s32.totalorder %v193_v37, 2  ;;  %s701_s17 = scalar_lea.vmem %s610_s14, 256  ;;  %p706_p1 = scmp.lt.s32.totalorder %s610_s14, %s610_s14 }
  0xfb   :  { %v198_v55 = vshrl.u32 %v751_v47, %v195_v42  ;;  %v201_v56 = vshrl.u32 %v752_v49, %v195_v42  ;;  %v204_v57 = vshrl.u32 %v753_v51, %v195_v42  ;;  %v196_v58 = vshrl.u32 %v750_v43, %v195_v42  ;;  %p702_p0 = scmp.ne.s32.totalorder %s610_s14, %s701_s17  ;;  %p707_p2 = scmp.lt.s32.totalorder %s701_s17, %s701_s17 }
  0xfc   :  { %v207_v59 = vshrl.u32 %v754_v53, %v195_v42  ;;  %v210_v61 = vshrl.u32 %v755_v60, %v195_v42  ;;  %v298_v1 = vsub.s32 32, %v297_v46  ;;  %vm214_vm5 = vcmp.lt.s32.totalorder %v193_v37, 3 }
  0xfd   :  { %v199_v62 = vor.u32 %v198_v55, %v197_v44  ;;  %v202_v63 = vor.u32 %v201_v56, %v200_v48  ;;  %v205_v0 = vor.u32 %v204_v57, %v203_v50  ;;  %vm215_vm6 = vcmp.lt.s32.totalorder %v193_v37, 4  ;;  %p708_p3 = por %p707_p2, %p706_p1 }
  0xfe   :  { %v208_v2 = vor.u32 %v207_v59, %v206_v52  ;;  %v211_v3 = vor.u32 %v210_v61, %v209_v54  ;;  %v300_v13 = vshll.u32 %v750_v43, %v297_v46  ;;  %v301_v16 = vshrl.u32 %v751_v47, %v298_v1 }
  0xff   :  { %v216_v4 = vsel %vm212_vm3, %v196_v58, %v199_v62  ;;  %v217_v5 = vsel %vm215_vm6, %v205_v0, 2102212464  ;;  %v220_v6 = vsel %vm212_vm3, %v199_v62, %v202_v63  ;;  %v224_v7 = vsel %vm212_vm3, %v202_v63, %v205_v0  ;;  %p709_p4 = pnand %p708_p3, %p702_p0 }
 0x100   :  { %v218_v8 = vsel %vm214_vm5, %v202_v63, %v217_v5  ;;  %v221_v9 = vsel %vm215_vm6, %v208_v2, 920167782  ;;  %v225_v12 = vsel %vm215_vm6, %v211_v3, 1326507024  ;;  %v303_v17 = vshll.u32 %v751_v47, %v297_v46 }
 0x101   :  { %v222_v14 = vsel %vm214_vm5, %v205_v0, %v221_v9  ;;  %v226_v15 = vsel %vm214_vm5, %v208_v2, %v225_v12  ;;  %v219_v18 = vsel %vm213_vm4, %v216_v4, %v218_v8  ;;  %v304_v24 = vshrl.u32 %v752_v49, %v298_v1 }
 0x102   :  { %v223_v19 = vsel %vm213_vm4, %v220_v6, %v222_v14  ;;  %v227_v20 = vsel %vm213_vm4, %v224_v7, %v226_v15  ;;  %v302_v30 = vor.u32 %v301_v16, %v300_v13  ;;  %v306_v32 = vshll.u32 %v752_v49, %v297_v46  ;;  %v690_v15 = vpop.eup %689 }
 0x103   :  { %v856_v25 = vmul.u32.u64.low %v844_v40, %v227_v20  ;;  %v857_v26 = vmul.u32.u64.high %v844_v40, %v227_v20, %v856_v25  ;;  %v860_v27 = vmul.u32.u64.low %v844_v40, %v223_v19  ;;  %v861_v29 = vmul.u32.u64.high %v844_v40, %v223_v19, %v860_v27 }
 0x104   :  { %v305_v31 = vor.u32 %v304_v24, %v303_v17  ;;  %v307_v33 = vshrl.u32 %v753_v51, %v298_v1  ;;  %v309_v34 = vshll.u32 %v753_v51, %v297_v46  ;;  %v310_v35 = vshrl.u32 %v754_v53, %v298_v1 }
 0x105   :  { %v313_v36 = vshrl.u32 %v755_v60, %v298_v1  ;;  %v331_v38 = vshll.u32 %v291_v41, 8  ;;  %v235_v37 = vmul.u32 %v844_v40, %v219_v18  ;;  %v299_v39 = vshrl.u32 %v750_v43, %v298_v1 }
 0x106   :  { %v308_v42 = vor.u32 %v307_v33, %v306_v32  ;;  %v312_v44 = vshll.u32 %v754_v53, %v297_v46  ;;  %vm237_vm7 = vc.u32 %v857_v26, %v860_v27  ;;  %v238_v47 = vadd.s32 1, %v861_v29 }
 0x107   :  { %v311_v48 = vor.u32 %v310_v35, %v309_v34  ;;  %vm315_vm8 = vcmp.lt.s32.totalorder %v847_v45, 1  ;;  %vm317_vm9 = vcmp.lt.s32.totalorder %v847_v45, 3  ;;  %vm318_vm10 = vcmp.lt.s32.totalorder %v847_v45, 4  ;;  %v692_v34 = vpop.eup %691 }
 0x108   :  { %v314_v50 = vor.u32 %v313_v36, %v312_v44  ;;  %v323_v49 = vsel %vm315_vm8, %v302_v30, %v305_v31  ;;  %v239_v41 = vsel %vm237_vm7, %v238_v47, %v861_v29  ;;  %v320_v40 = vsel %vm318_vm10, %v308_v42, 2102212464 }
 0x109   :  { %v324_v43 = vsel %vm318_vm10, %v311_v48, 920167782  ;;  %v327_v51 = vsel %vm315_vm8, %v305_v31, %v308_v42  ;;  %v240_v46 = vadd.s32 %v239_v41, %v235_v37  ;;  %vm316_vm11 = vcmp.lt.s32.totalorder %v847_v45, 2 }
 0x10a   :  { %v325_v52 = vsel %vm317_vm9, %v308_v42, %v324_v43  ;;  %v328_v53 = vsel %vm318_vm10, %v314_v50, 1326507024  ;;  %v319_v54 = vsel %vm315_vm8, %v299_v39, %v302_v30  ;;  %v321_v55 = vsel %vm317_vm9, %v305_v31, %v320_v40 }
 0x10b   :  { %v326_v56 = vsel %vm316_vm11, %v323_v49, %v325_v52  ;;  %v329_v57 = vsel %vm317_vm9, %v311_v48, %v328_v53  ;;  %v241_v58 = vadd.s32 536870912, %v240_v46  ;;  %v322_v1 = vsel %vm316_vm11, %v319_v54, %v321_v55 }
 0x10c   :  { %v330_v59 = vsel %vm316_vm11, %v327_v51, %v329_v57  ;;  %v873_v60 = vmul.u32.u64.low %v331_v38, %v326_v56  ;;  %v874_v61 = vmul.u32.u64.high %v331_v38, %v326_v56, %v873_v60  ;;  %v338_v3 = vmul.u32 %v331_v38, %v322_v1 }
 0x10d   :  { %v876_v62 = vmul.u32.u64.low %v331_v38, %v330_v59  ;;  %v877_v63 = vmul.u32.u64.high %v331_v38, %v330_v59, %v876_v62  ;;  %v879_v0 = vshrl.u32 %v241_v58, 30  ;;  %v146_v20 = vmul.f32 %v690_v15, %v823_v11 }
 0x10e   :  { %v341_v2 = vadd.s32 1, %v874_v61  ;;  %v236_v24 = vadd.s32 %v860_v27, %v857_v26  ;;  %v147_v44 = vmul.f32 %v692_v34, %v821_v10  ;;  %vm272_vm9 = vweird.f32 %v830_v21 }
 0x10f   :  { %v243_v45 = vshll.u32 %v879_v0, 30  ;;  %vm340_vm12 = vc.u32 %v877_v63, %v873_v60  ;;  %v148_v36 = vsub.f32 2.0, %v146_v20  ;;  %v339_v27 = vadd.s32 %v873_v60, %v877_v63 }
 0x110   :  { %v342_v5 = vsel %vm340_vm12, %v341_v2, %v874_v61  ;;  %v266_v43 = vsub.s32 4, %v879_v0  ;;  %v149_v51 = vsub.f32 2.0, %v147_v44 }
 0x111   :  { %v244_v4 = vsub.s32 %v240_v46, %v243_v45  ;;  %v343_v6 = vadd.s32 %v342_v5, %v338_v3  ;;  %v150_v47 = vmul.f32 %v690_v15, %v148_v36 }
 0x112   :  { %v267_v59 = vsel %vm182_vm15, %v266_v43, %v879_v0  ;;  %v151_v60 = vmul.f32 %v692_v34, %v149_v51  ;;  %v161_v0 = vpop.permute.xlu1 %160 }
 0x113   :  { %v246_v7 = vsub.s32 0, %v244_v4  ;;  %v344_v8 = vadd.s32 536870912, %v343_v6  ;;  %v152_v54 = vmul.f32 %v150_v47, %v823_v11  ;;  %v269_v45 = vsel %vm181_vm0, 0, %v267_v59 }
 0x114   :  { %v153_v2 = vmul.f32 %v151_v60, %v821_v10  ;;  %v483_v23 = vadd.s32 3, %v269_v45  ;;  %v273_v10 = vand.u32 3, %v269_v45 }
 0x115   :  { %v641_v9 = vmin.u32 %v246_v7, %v244_v4  ;;  %v887_v12 = vshrl.u32 %v344_v8, 30  ;;  %v154_v63 = vsub.f32 2.0, %v152_v54 }
 0x116   :  { %v155_v7 = vsub.f32 2.0, %v153_v2  ;;  %v484_v15 = vand.u32 3, %v483_v23  ;;  %vm275_vm3 = vcmp.eq.s32.totalorder %v273_v10, 0  ;;  %vm278_vm4 = vcmp.eq.s32.totalorder %v273_v10, 2 }
 0x117   :  { %v248_v13 = vclz %v641_v9  ;;  %v346_v14 = vshll.u32 %v887_v12, 30  ;;  %v369_v5 = vsub.s32 4, %v887_v12  ;;  %vm274_vm7 = vcmp.lt.s32.totalorder %v273_v10, 2 }
 0x118   :  { %vm489_vm5 = vcmp.eq.s32.totalorder %v484_v15, 2  ;;  %vm486_vm6 = vcmp.eq.s32.totalorder %v484_v15, 0  ;;  %vm485_vm8 = vcmp.lt.s32.totalorder %v484_v15, 2 }
 0x119   :  { %v642_v16 = vadd.s32 4294967294, %v248_v13  ;;  %v347_v17 = vsub.s32 %v343_v6, %v346_v14  ;;  %v370_v13 = vsel %vm285_vm1, %v369_v5, %v887_v12 }
 0x11b   :  { %vm643_vm13 = vcmp.lt.s32.totalorder %v642_v16, 0  ;;  %v349_v19 = vsub.s32 0, %v347_v17 }
 0x11c   :  { %v251_v18 = vsel %vm643_vm13, 0, %v642_v16 }
 0x11d   :  { %v252_v25 = vsub.s32 32, %v251_v18  ;;  %v256_v29 = vsub.s32 4294967266, %v251_v18  ;;  %v645_v30 = vmin.u32 %v349_v19, %v347_v17  ;;  %v253_v31 = vshll.u32 %v244_v4, %v251_v18 }
 0x11e   :  { %v156_v4 = vmul.f32 %v154_v63, %v150_v47 }
 0x11f   :  { %v254_v32 = vshrl.u32 %v236_v24, %v252_v25  ;;  %v257_v33 = vadd.s32 127, %v256_v29  ;;  %v351_v35 = vclz %v645_v30  ;;  %v157_v24 = vmul.f32 %v155_v7, %v151_v60  ;;  %v166_v30 = vpop.permute.xlu1 %165 }
 0x120   :  { %v168_v9 = vmul.f32 %v161_v0, %v156_v4 }
 0x121   :  { %v255_v38 = vor.u32 %v254_v32, %v253_v31  ;;  %v258_v37 = vshll.u32 %v257_v33, 23  ;;  %v646_v39 = vadd.s32 4294967294, %v351_v35 }
 0x122   :  { %v170_v19 = vmul.f32 %v168_v9, %v168_v9 }
 0x123   :  { %v259_v42 = vor.u32 4788187, %v258_v37  ;;  %vm647_vm14 = vcmp.lt.s32.totalorder %v646_v39, 0  ;;  %v262_v50 = vcvt.s32.f32 %v255_v38 }
 0x124   :  { %v354_v26 = vsel %vm647_vm14, 0, %v646_v39  ;;  %v178_v34 = vmul.f32 %v639_v28, %v170_v19  ;;  %v169_v39 = vmul.f32 %v166_v30, %v157_v24 }
 0x125   :  { %v260_v48 = vand.u32 2147483647, %v259_v42  ;;  %v355_v49 = vsub.s32 32, %v354_v26  ;;  %v359_v41 = vsub.s32 4294967266, %v354_v26  ;;  %v356_v46 = vshll.u32 %v347_v17, %v354_v26 }
 0x126   :  { %v372_v17 = vsel %vm284_vm2, 0, %v370_v13 }
 0x127   :  { %v263_v40 = vmul.f32 %v262_v50, %v260_v48  ;;  %v357_v52 = vshrl.u32 %v339_v27, %v355_v49  ;;  %v360_v53 = vadd.s32 127, %v359_v41  ;;  %v587_v31 = vadd.s32 3, %v372_v17 }
 0x128   :  { %v376_v47 = vand.u32 3, %v372_v17  ;;  %v171_v49 = vmul.f32 %v169_v39, %v169_v39 }
 0x129   :  { %v264_v55 = vxor.u32 2147483648, %v263_v40  ;;  %v358_v56 = vor.u32 %v357_v52, %v356_v46  ;;  %v361_v57 = vshll.u32 %v360_v53, 23  ;;  %v588_v48 = vand.u32 3, %v587_v31 }
 0x12a   :  { %vm381_vm10 = vcmp.eq.s32.totalorder %v376_v47, 2  ;;  %vm378_vm12 = vcmp.eq.s32.totalorder %v376_v47, 0  ;;  %vm377_vm14 = vcmp.lt.s32.totalorder %v376_v47, 2  ;;  %v179_v52 = vmul.f32 %v639_v28, %v171_v49 }
 0x12b   :  { %v265_v58 = vsel %vm182_vm15, %v264_v55, %v263_v40  ;;  %v362_v62 = vor.u32 4788187, %v361_v57  ;;  %v365_v11 = vcvt.s32.f32 %v358_v56  ;;  %vm593_vm11 = vcmp.eq.s32.totalorder %v588_v48, 2 }
 0x12c   :  { %v268_v61 = vsel %vm181_vm0, %v830_v21, %v265_v58  ;;  %vm590_vm13 = vcmp.eq.s32.totalorder %v588_v48, 0  ;;  %vm589_vm15 = vcmp.lt.s32.totalorder %v588_v48, 2  ;;  %vm375_vm0 = vweird.f32 %v832_v22 }
 0x12d   :  { %693 = vcosq.f32 %v268_v61  ;;  %v363_v1 = vand.u32 2147483647, %v362_v62 }
 0x12e   :  { %695 = vsinq.f32 %v268_v61 }
 0x12f   :  { %v366_v3 = vmul.f32 %v365_v11, %v363_v1 }
 0x131   :  { %v367_v6 = vxor.u32 2147483648, %v366_v3 }
 0x133   :  { %v368_v8 = vsel %vm285_vm1, %v367_v6, %v366_v3 }
 0x134   :  { %v371_v14 = vsel %vm284_vm2, %v832_v22, %v368_v8 }
 0x135   :  { %697 = vcosq.f32 %v371_v14 }
 0x136   :  { %699 = vsinq.f32 %v371_v14 }
 0x137   :  { %v694_v16 = vpop.eup %693 }
 0x138   :  { %v696_v18 = vpop.eup %695  ;;  %v279_v20 = vxor.u32 2147483648, %v694_v16 }
 0x139   :  { %v276_v25 = vxor.u32 2147483648, %v696_v18 }
 0x13a   :  { %v280_v12 = vsel %vm278_vm4, %v279_v20, %v696_v18  ;;  %v491_v29 = vsel %vm489_vm5, %v279_v20, %v696_v18 }
 0x13b   :  { %v277_v32 = vsel %vm275_vm3, %v694_v16, %v276_v25  ;;  %v488_v33 = vsel %vm486_vm6, %v694_v16, %v276_v25 }
 0x13c   :  { %v281_v35 = vsel %vm274_vm7, %v277_v32, %v280_v12  ;;  %v492_v36 = vsel %vm485_vm8, %v488_v33, %v491_v29 }
 0x13d   :  { %v282_v38 = vsel %vm272_vm9, nan, %v281_v35  ;;  %v493_v37 = vsel %vm272_vm9, nan, %v492_v36 }
 0x13e   :  { %v386_v42 = vmul.f32 %v282_v38, %v178_v34  ;;  %v598_v44 = vmul.f32 %v493_v37, %v178_v34 }
 0x13f   :  { %v698_v50 = vpop.eup %697 }
 0x140   :  { %388 = vst [vmem:[#allocation2] sm:$0xff] %v386_v42  ;;  %v600_v26 = vsub.f32 0.0, %v598_v44  ;;  %v700_v27 = vpop.eup %699  ;;  %v382_v41 = vxor.u32 2147483648, %v698_v50 }
 0x141   :  { %v379_v40 = vxor.u32 2147483648, %v700_v27 }
 0x142   :  { %602 = vst [vmem:[#allocation4] sm:$0xff] %v600_v26  ;;  %v383_v21 = vsel %vm381_vm10, %v382_v41, %v700_v27  ;;  %v595_v43 = vsel %vm593_vm11, %v382_v41, %v700_v27 }
 0x143   :  { %v380_v51 = vsel %vm378_vm12, %v698_v50, %v379_v40  ;;  %v592_v46 = vsel %vm590_vm13, %v698_v50, %v379_v40 }
 0x144   :  { %v384_v53 = vsel %vm377_vm14, %v380_v51, %v383_v21  ;;  %v596_v54 = vsel %vm589_vm15, %v592_v46, %v595_v43 }
 0x145   :  { %v385_v55 = vsel %vm375_vm0, nan, %v384_v53  ;;  %v597_v56 = vsel %vm375_vm0, nan, %v596_v54 }
 0x146   :  { %v387_v57 = vmul.f32 %v385_v55, %v179_v52  ;;  %v599_v58 = vmul.f32 %v597_v56, %v179_v52 }
 0x148   :  { %389 = vst [vmem:[#allocation2 + $0x8] sm:$0xff] %v387_v57  ;;  %v601_v59 = vsub.f32 0.0, %v599_v58 }
 0x149   :  { %712 = shalt.err (!%p709_p4)
}
 0x14a   :  { %s713_s20 = scalar_lea.hbm %s951_s6, 256 }
 0x14b   :  { %p714_p5 = scmp.ne.s32.totalorder %s951_s6, %s713_s20  ;;  %p717_p6 = scmp.lt.u32.totalorder %s713_s20, %s951_s6 }
 0x14d   :  { %p719_p7 = pnand %p717_p6, %p714_p5 }
 0x14f   :  { %722 = shalt.err (!%p719_p7)
}
 0x150   :  { %s758_s25 = smov 128   ;;  %s759_s26 = smov 8   ;;  %603 = vst [vmem:[#allocation4 + $0x8] sm:$0xff] %v601_v59 }
 0x151   :  { %615 = dma.vmem_to_hbm [thread:$0]  %s610_s14, 256, %s951_s6, [#allocation3], %s758_s25, %s758_s25, %s759_s26  }
 0x152   :  { %s723_s29 = scalar_lea.vmem %s914_s16, 256  ;;  %p728_p9 = scmp.lt.s32.totalorder %s914_s16, %s914_s16 }
 0x153   :  { %p724_p8 = scmp.ne.s32.totalorder %s914_s16, %s723_s29  ;;  %p729_p10 = scmp.lt.s32.totalorder %s723_s29, %s723_s29 }
 0x155   :  { %p730_p11 = por %p729_p10, %p728_p9 }
 0x157   :  { %p731_p12 = pnand %p730_p11, %p724_p8 }
 0x159   :  { %734 = shalt.err (!%p731_p12)
}
 0x15a   :  { %s735_s9 = scalar_lea.hbm %s952_s7, 256 }
 0x15b   :  { %p736_p13 = scmp.ne.s32.totalorder %s952_s7, %s735_s9  ;;  %p739_p0 = scmp.lt.u32.totalorder %s735_s9, %s952_s7 }
 0x15d   :  { %p741_p1 = pnand %p739_p0, %p736_p13 }
 0x15f   :  { %744 = shalt.err (!%p741_p1)
}
 0x160   :  { %627 = dma.vmem_to_hbm [thread:$0]  %s914_s16, 256, %s952_s7, [#allocation5], %s758_s25, %s758_s25, %s759_s26  }
 0x161   :  { %745 = dma.done.wait [#allocation3], 256  }
 0x162   :  { %746 = vsyncadd [#allocation3], 4294967040 }
 0x163   :  { %747 = dma.done.wait [#allocation5], 256  }
 0x164   :  { %748 = vsyncadd [#allocation5], 4294967040 }
 0x165   :  { %634 = vsyncpa [#allocation3], 1 }
 0x166   :  { %635 = vsyncpa [#allocation5], 1 }

</bundles_post_ra>
